<compile_context>
chip_gen: v5e
topology: v5e:2x2
jax: 0.10.0
libtpu: 0.0.40
codegen_flags: <defaults>
</compile_context>

<pallas_src>
import functools
import math

import jax
import jax.numpy as jnp
from jax.experimental import pallas as pl
from jax.experimental.pallas import tpu as pltpu


def _round_up(x, m):
    return ((x + m - 1) // m) * m


def _pick_tile(dim, candidates=(512, 256, 128)):
    for c in candidates:
        if dim >= c and dim % c == 0:
            return c
    return dim


@functools.lru_cache(maxsize=1)
def _vmem_budget_bytes():
    cap = 64 * 1024 * 1024
    try:
        cap = int(pltpu.get_tpu_info().vmem_capacity_bytes)
    except Exception:
        pass
    # ~75% of physical, capped at 96 MiB: ≈48 MiB on v7x, ≈96 MiB on v5e/v6e.
    return min(cap * 3 // 4, 96 * 1024 * 1024)


# ---------------------------------------------------------------------------
# Kernels
# ---------------------------------------------------------------------------
def _small_k_kernel(x_ref, wt_ref, b_ref, o_ref, *, k_dim):
    # x_ref: [tm, K] (K tiny), wt_ref: [K, Np], b_ref: [1, Np], o_ref: [tm, Np]
    acc = jnp.zeros(o_ref.shape, jnp.float32)
    for k in range(k_dim):  # static unroll over tiny K -> pure VPU FMA chain, no MXU
        acc = acc + (x_ref[:, k:k + 1].astype(jnp.float32)
                     * wt_ref[k:k + 1, :].astype(jnp.float32))
    o_ref[...] = (acc + b_ref[...]).astype(o_ref.dtype)


def _k_resident_kernel(x_ref, wt_ref, b_ref, o_ref):
    # Single MXU pass per output tile: x [tm, Kp] @ wt [Kp, tn] + b [1, tn].
    acc = jnp.dot(x_ref[...], wt_ref[...], preferred_element_type=jnp.float32)
    o_ref[...] = (acc + b_ref[...]).astype(o_ref.dtype)


def _multi_k_kernel(x_ref, wt_ref, b_ref, o_ref):
    # o_ref is f32 and resident across the innermost K axis: accumulate in place,
    # bias folded into the first K step (no scratch accumulator, no epilogue copy).
    k = pl.program_id(2)
    partial = jnp.dot(x_ref[...], wt_ref[...], preferred_element_type=jnp.float32)

    @pl.when(k == 0)
    def _():
        o_ref[...] = partial + b_ref[...]

    @pl.when(k > 0)
    def _():
        o_ref[...] += partial


# ---------------------------------------------------------------------------
# Wrapper (prepares / caches padded params once; jit-compiled forward)
# ---------------------------------------------------------------------------
class PallasLinear:
    """PyTorch nn.Linear forward: x [B, in] -> x @ W^T + b, W [out, in], b [out]."""

    def __init__(self, weight, bias, *, mxu_dtype=None, force_multi_k=False):
        N, K = weight.shape            # PyTorch layout [out_features, in_features]
        self.K, self.N = K, N
        self.mxu_dtype = mxu_dtype
        self.force_multi_k = force_multi_k
        self.vmem_budget = _vmem_budget_bytes()
        self.small_k = K <= 8

        Np = _round_up(N, 128)
        Kp = K if self.small_k else _round_up(K, 128)
        self.Kp, self.Np = Kp, Np

        # One-time transpose + pad of the static weight: [Kp, Np] (lane-major N).
        wt_p = jnp.pad(weight.T, ((0, Kp - K), (0, Np - N)))
        if mxu_dtype is not None and not self.small_k:
            wt_p = wt_p.astype(mxu_dtype)
        self.wt_p = wt_p
        self.b_p = jnp.pad(bias.reshape(1, N), ((0, 0), (0, Np - N))).astype(jnp.float32)

        self._jitted = jax.jit(self._forward)

    def __call__(self, x):
        return self._jitted(x)

    # -- dispatch -----------------------------------------------------------
    def _forward(self, x):
        B, K = x.shape
        assert K == self.K, f"expected in_features={self.K}, got {K}"
        if self.small_k:
            return self._forward_small_k(x)
        return self._forward_matmul(x)

    # -- Path A: tiny contraction (VPU) --------------------------------------
    def _forward_small_k(self, x):
        B, K = x.shape
        Np = self.Np
        tm = min(512, _round_up(B, 8))
        Bp = _round_up(B, tm)
        x_p = jnp.pad(x, ((0, Bp - B), (0, 0)))

        out = pl.pallas_call(
            functools.partial(_small_k_kernel, k_dim=K),
            out_shape=jax.ShapeDtypeStruct((Bp, Np), x.dtype),
            grid_spec=pltpu.PrefetchScalarGridSpec(
                num_scalar_prefetch=0,
                grid=(Bp // tm,),
                in_specs=[
                    pl.BlockSpec((tm, K), lambda i: (i, 0)),
                    pl.BlockSpec((K, Np), lambda i: (0, 0)),
                    pl.BlockSpec((1, Np), lambda i: (0, 0)),
                ],
                out_specs=pl.BlockSpec((tm, Np), lambda i: (i, 0)),
            ),
            compiler_params=pltpu.CompilerParams(
                dimension_semantics=("parallel",),
                vmem_limit_bytes=self.vmem_budget,
            ),
        )(x_p, self.wt_p, self.b_p)
        return out[:B, :self.N]

    # -- Paths B / C: MXU matmul ---------------------------------------------
    def _forward_matmul(self, x):
        B, _ = x.shape
        Kp, Np, N = self.Kp, self.Np, self.N
        out_dtype = x.dtype
        in_dtype = self.mxu_dtype if self.mxu_dtype is not None else x.dtype
        in_bytes = jnp.dtype(in_dtype).itemsize
        out_bytes = jnp.dtype(out_dtype).itemsize

        tm = 256 if B >= 256 else _round_up(B, 8)
        Bp = _round_up(B, tm)

        # K-resident check: double-buffered x/wt tiles + double-buffered out tile.
        tn_resident = None
        if not self.force_multi_k:
            for tn in (512, 256, 128):
                if Np < tn or Np % tn != 0:
                    continue
                need = (2 * (tm * Kp + Kp * tn) * in_bytes
                        + 2 * tm * tn * out_bytes
                        + 2 * tn * 4)
                if need <= self.vmem_budget:
                    tn_resident = tn
                    break

        x_p = jnp.pad(x, ((0, Bp - B), (0, Kp - self.K))).astype(in_dtype)

        if tn_resident is not None:
            tn = tn_resident
            out = pl.pallas_call(
                _k_resident_kernel,
                out_shape=jax.ShapeDtypeStruct((Bp, Np), out_dtype),
                grid_spec=pltpu.PrefetchScalarGridSpec(
                    num_scalar_prefetch=0,
                    grid=(Bp // tm, Np // tn),
                    in_specs=[
                        pl.BlockSpec((tm, Kp), lambda i, j: (i, 0)),
                        pl.BlockSpec((Kp, tn), lambda i, j: (0, j)),
                        pl.BlockSpec((1, tn), lambda i, j: (0, j)),
                    ],
                    out_specs=pl.BlockSpec((tm, tn), lambda i, j: (i, j)),
                ),
                compiler_params=pltpu.CompilerParams(
                    dimension_semantics=("parallel", "parallel"),
                    vmem_limit_bytes=self.vmem_budget,
                ),
            )(x_p, self.wt_p, self.b_p)
            return out[:B, :N]

        # Multi-K fallback: K innermost; f32 output tile resident across K.
        tn = _pick_tile(Np)
        tk = _pick_tile(Kp)
        out = pl.pallas_call(
            _multi_k_kernel,
            out_shape=jax.ShapeDtypeStruct((Bp, Np), jnp.float32),
            grid_spec=pltpu.PrefetchScalarGridSpec(
                num_scalar_prefetch=0,
                grid=(Bp // tm, Np // tn, Kp // tk),
                in_specs=[
                    pl.BlockSpec((tm, tk), lambda i, j, k: (i, k)),
                    pl.BlockSpec((tk, tn), lambda i, j, k: (k, j)),
                    pl.BlockSpec((1, tn), lambda i, j, k: (0, j)),
                ],
                out_specs=pl.BlockSpec((tm, tn), lambda i, j, k: (i, j)),
            ),
            compiler_params=pltpu.CompilerParams(
                dimension_semantics=("parallel", "parallel", "arbitrary"),
                vmem_limit_bytes=self.vmem_budget,
            ),
        )(x_p, self.wt_p, self.b_p)
        out = out[:B, :N]
        return out if out_dtype == jnp.float32 else out.astype(out_dtype)


def init_linear_params(key, in_features, out_features, dtype=jnp.float32):
    # torch.nn.Linear default init: U(-1/sqrt(in), 1/sqrt(in))
    bound = 1.0 / math.sqrt(in_features)
    k_w, k_b = jax.random.split(key)
    weight = jax.random.uniform(
        k_w, (out_features, in_features), dtype=dtype, minval=-bound, maxval=bound)
    bias = jax.random.uniform(
        k_b, (out_features,), dtype=dtype, minval=-bound, maxval=bound)
    return weight, bias


if __name__ == "__main__":
    key = jax.random.PRNGKey(0)
    k_params, k_params2, k_x2 = jax.random.split(key, 3)

    # --- Module demo: linear_regression(1, 10) applied to x = [[1.0]] (Path A) ---
    input_size, output_size = 1, 10
    weight, bias = init_linear_params(k_params, input_size, output_size)
    model = PallasLinear(weight, bias)
    x = jnp.array([[1.0]], dtype=jnp.float32)

    yhat = jax.block_until_ready(model(x))
    ref = x @ weight.T + bias
    assert yhat.shape == (1, output_size)
    assert jnp.allclose(yhat, ref, atol=1e-5, rtol=1e-5)

    # --- K-resident MXU path (Path B): one pass per output tile ---
    B2, in2, out2 = 160, 320, 384
    w2, b2 = init_linear_params(k_params2, in2, out2)
    x2 = jax.random.normal(k_x2, (B2, in2), dtype=jnp.float32)
    model2 = PallasLinear(w2, b2)
    y2 = jax.block_until_ready(model2(x2))
    ref2 = x2 @ w2.T + b2
    assert y2.shape == (B2, out2)
    assert jnp.allclose(y2, ref2, atol=1e-4, rtol=1e-4)

    # --- Multi-K fallback (Path C): output tile accumulated in place across K ---
    model3 = PallasLinear(w2, b2, force_multi_k=True)
    y3 = jax.block_until_ready(model3(x2))
    assert jnp.allclose(y3, ref2, atol=1e-4, rtol=1e-4)

    print("KERNEL_OK")
</pallas_src>

<mosaic_0001>
module attributes {stable_mosaic.version = 11 : i64} {
  func.func @_small_k_kernel(%arg0: i32, %arg1: memref<8x1xf32, #tpu.memory_space<vmem>>, %arg2: memref<1x128xf32, #tpu.memory_space<vmem>>, %arg3: memref<1x128xf32, #tpu.memory_space<vmem>>, %arg4: memref<8x128xf32, #tpu.memory_space<vmem>>) attributes {dimension_semantics = [#tpu.dimension_semantics<parallel>], iteration_bounds = array<i64: 1>, scalar_prefetch = 0 : i64, scratch_operands = 0 : i64, tpu.core_type = #tpu.core_type<tc>, window_params = [{transform_indices = @transform_0, window_bounds = array<i64: 8, 1>}, {pipeline_mode = #tpu.pipeline_mode<synchronous>, transform_indices = @transform_1, window_bounds = array<i64: 1, 128>}, {pipeline_mode = #tpu.pipeline_mode<synchronous>, transform_indices = @transform_2, window_bounds = array<i64: 1, 128>}, {transform_indices = @transform_3, window_bounds = array<i64: 8, 128>}]} {
    %cst = arith.constant 0.000000e+00 : f32
    %0 = vector.broadcast %cst : f32 to vector<8x128xf32>
    %c0 = arith.constant 0 : index
    %c0_0 = arith.constant 0 : index
    %1 = vector.load %arg1[%c0, %c0_0] : memref<8x1xf32, #tpu.memory_space<vmem>>, vector<8x1xf32>
    %c0_1 = arith.constant 0 : index
    %c0_2 = arith.constant 0 : index
    %2 = vector.load %arg2[%c0_1, %c0_2] : memref<1x128xf32, #tpu.memory_space<vmem>>, vector<1x128xf32>
    %3 = vector.broadcast %1 : vector<8x1xf32> to vector<8x128xf32>
    %4 = vector.broadcast %2 : vector<1x128xf32> to vector<8x128xf32>
    %5 = arith.mulf %3, %4 : vector<8x128xf32>
    %6 = arith.addf %0, %5 : vector<8x128xf32>
    %c0_3 = arith.constant 0 : index
    %c0_4 = arith.constant 0 : index
    %7 = vector.load %arg3[%c0_3, %c0_4] : memref<1x128xf32, #tpu.memory_space<vmem>>, vector<1x128xf32>
    %8 = vector.broadcast %7 : vector<1x128xf32> to vector<8x128xf32>
    %9 = arith.addf %6, %8 : vector<8x128xf32>
    %c0_5 = arith.constant 0 : index
    %c0_6 = arith.constant 0 : index
    %10 = vector.load %arg4[%c0_5, %c0_6] : memref<8x128xf32, #tpu.memory_space<vmem>>, vector<8x128xf32>
    tpu.vector_store %arg4[%c0_5, %c0_6], %9 {strides = array<i32>} : memref<8x128xf32, #tpu.memory_space<vmem>>, vector<8x128xf32>,
    return
  }
  func.func @transform_0(%arg0: i32) -> (i32, i32) {
    %c0_i32 = arith.constant 0 : i32
    %c0_i32_0 = arith.constant 0 : i32
    return %arg0, %c0_i32 : i32, i32
  }
  func.func @transform_1(%arg0: i32) -> (i32, i32) {
    %c0_i32 = arith.constant 0 : i32
    %c0_i32_0 = arith.constant 0 : i32
    %c0_i32_1 = arith.constant 0 : i32
    return %c0_i32, %c0_i32_0 : i32, i32
  }
  func.func @transform_2(%arg0: i32) -> (i32, i32) {
    %c0_i32 = arith.constant 0 : i32
    %c0_i32_0 = arith.constant 0 : i32
    %c0_i32_1 = arith.constant 0 : i32
    return %c0_i32, %c0_i32_0 : i32, i32
  }
  func.func @transform_3(%arg0: i32) -> (i32, i32) {
    %c0_i32 = arith.constant 0 : i32
    %c0_i32_0 = arith.constant 0 : i32
    return %arg0, %c0_i32 : i32, i32
  }
}

</mosaic_0001>

<bundles_post_ra>
// kernel: _forward.1
= control target key start
LH: loop header
LB: loop body
LE: loop exit
PB: predicated region body
PF: predicated region fallthrough
CT: control target
= control target key end

     0   :  { %v40_v0 = vmov 0   ;;  %s73_s0 = inlined_call_operand.vmem [shape: f32[8,1], index: 0, kind: input, shape index: {}]   ;;  %s74_s1 = inlined_call_operand.vmem [shape: f32[1,128], index: 1, kind: input, shape index: {}]   ;;  %s75_s2 = inlined_call_operand.vmem [shape: f32[1,128], index: 2, kind: input, shape index: {}]   ;;  %s76_s3 = inlined_call_operand.vmem [shape: f32[8,128], index: 3, kind: output, shape index: {}]  }
   0x1   :  { %37 = vset.pattern.permute.xlu0 %v40_v0  ;;  %v14_v1 = vld [vmem:[%s73_s0] sm:$0xff] }
   0x2   :  { %18 = vperm.xlu0 %37, %v14_v1   ;;  %v38_v2 = vld [vmem:[%s74_s1] ss:$0 sm:$0xff] }
   0x3   :  { %v39_v3 = vld [vmem:[%s75_s2] ss:$0 sm:$0xff] }
  0x74   :  { %v19_v4 = vpop.permute.xlu0 %18 }
  0x75   :  { %v24_v5 = vmul.f32 %v38_v2, %v19_v4 }
  0x77   :  { %v30_v6 = vadd.f32 %v39_v3, %v24_v5 }
  0x79   :  { %31 = vst [vmem:[%s76_s3] sm:$0xff] %v30_v6 }

</bundles_post_ra>
